<compile_context>
chip_gen: v6e
topology: v6e:2x2x1
jax: 0.10.0
libtpu: 0.0.40
codegen_flags: <defaults>
</compile_context>

<pallas_src>
import functools

import jax
import jax.numpy as jnp
from jax.experimental import pallas as pl
from jax.experimental.pallas import tpu as pltpu

LANE = 128                           # lane width / channel padding granularity
MAX_TILE_N = 1024                    # node-dimension tile cap (sweep 512..2048)
X_RESIDENT_MAX_BYTES = 8 * 1024 * 1024   # keep x VMEM-resident below this


def _round_up(v, m):
    return ((v + m - 1) // m) * m


def _pad2d(arr, rows, cols):
    return jnp.pad(arr, ((0, rows - arr.shape[0]), (0, cols - arr.shape[1])))


def _vmem_limit_bytes():
    """Generation-aware scoped-VMEM limit (headroom below physical capacity)."""
    try:
        cap = pltpu.get_tpu_info().vmem_capacity_bytes
    except Exception:
        cap = 64 * 1024 * 1024
    # ~3/4 of physical: ~96 MiB on v5e/v6e (128 MiB), ~48 MiB on v7x (64 MiB).
    return int(min(max(cap * 3 // 4, 32 * 1024 * 1024), 100 * 1024 * 1024))


def _choose_layout(n):
    """Node-dim padding + (tile_m, tile_k).

    Large tiles cut accumulator read-modify-write traffic and per-step
    overhead; tile_m is capped so there are >= 2 row tiles where possible so
    the 'parallel' i axis can shard across both v7x TensorCores.
    """
    n_lane = _round_up(max(n, 1), LANE)
    tile_k = min(MAX_TILE_N, n_lane)
    n_pad = _round_up(n, tile_k)
    tile_m = min(MAX_TILE_N, n_pad)
    if n_pad == tile_m and n_pad % (2 * LANE) == 0:
        tile_m = n_pad // 2          # at least 2 row tiles (megacore sharding)
    while n_pad % tile_m != 0:       # keep tile_m a 128-multiple divisor
        tile_m -= LANE
    return n_pad, tile_m, tile_k


def _sage_kernel_resident(a_ref, x_ref, invdeg_ref, wl_ref, wr_ref, b_ref,
                          o_ref, acc_ref, *, apply_relu, tile_m, tile_k):
    """One (i, k) grid step; x is fully VMEM-resident and sliced in-kernel.

    a_ref     : (tm, tk)   int8  edge-count adjacency tile (widened in-kernel)
    x_ref     : (Np, Cp)   bf16  all node features (resident across the grid)
    invdeg_ref: (tm, 1)    f32   per-row 1/deg (exact mean rescale)
    wl_ref    : (Cp, Co)   bf16  neighbor (lin_l) weight, resident
    wr_ref    : (Cp, Co)   bf16  root (lin_r) weight, resident
    b_ref     : (1, Co)    f32   lin_l bias, resident
    o_ref     : (tm, Co)         output tile (bf16 hidden / f32 last layer)
    acc_ref   : (tm, Cp)   f32   VMEM accumulator for sum_j A[i,j] * x[j]
    """
    i = pl.program_id(0)
    k = pl.program_id(1)

    @pl.when(k == 0)
    def _():
        acc_ref[...] = jnp.zeros_like(acc_ref)

    # int8 -> bf16 widen rides the VPU and hides under the (dominant) A DMA.
    a_tile = a_ref[...].astype(jnp.bfloat16)
    xk = x_ref[pl.ds(pl.multiple_of(k * tile_k, tile_k), tile_k), :]
    acc_ref[...] += jnp.dot(a_tile, xk, preferred_element_type=jnp.float32)

    @pl.when(k == pl.num_programs(1) - 1)
    def _():
        xm = x_ref[pl.ds(pl.multiple_of(i * tile_m, tile_m), tile_m), :]
        aggr = (acc_ref[...] * invdeg_ref[...]).astype(wl_ref.dtype)
        # Two dots instead of a lane-axis concat + single dot (same MXU FLOPs,
        # no (tm, 2*Cp) temp / relayout).
        out = jnp.dot(aggr, wl_ref[...], preferred_element_type=jnp.float32)
        out = out + jnp.dot(xm, wr_ref[...], preferred_element_type=jnp.float32)
        out = out + b_ref[...]
        if apply_relu:
            out = jnp.maximum(out, 0.0)
        o_ref[...] = out.astype(o_ref.dtype)


def _sage_kernel_streamed(a_ref, xk_ref, xm_ref, invdeg_ref, wl_ref, wr_ref,
                          b_ref, o_ref, acc_ref, *, apply_relu):
    """Fallback for large graphs: x K/M slices streamed per grid step."""
    k = pl.program_id(1)

    @pl.when(k == 0)
    def _():
        acc_ref[...] = jnp.zeros_like(acc_ref)

    a_tile = a_ref[...].astype(jnp.bfloat16)
    acc_ref[...] += jnp.dot(a_tile, xk_ref[...],
                            preferred_element_type=jnp.float32)

    @pl.when(k == pl.num_programs(1) - 1)
    def _():
        aggr = (acc_ref[...] * invdeg_ref[...]).astype(wl_ref.dtype)
        out = jnp.dot(aggr, wl_ref[...], preferred_element_type=jnp.float32)
        out = out + jnp.dot(xm_ref[...], wr_ref[...],
                            preferred_element_type=jnp.float32)
        out = out + b_ref[...]
        if apply_relu:
            out = jnp.maximum(out, 0.0)
        o_ref[...] = out.astype(o_ref.dtype)


def sage_layer(a, inv_deg, x, w_l, w_r, b, *, apply_relu, out_dtype,
               tile_m, tile_k, x_resident, triple_buffer_a=True):
    """One SAGEConv(mean) layer on padded inputs.

    a:       (Np, Np)  int8 edge counts, zero-padded
    inv_deg: (Np, 1)   f32  per-row 1/deg
    x:       (Np, Cp)  bf16 features, zero-padded
    w_l/w_r: (Cp, Co)  bf16 neighbor / root weights, zero-padded
    b:       (1, Co)   f32  bias, zero-padded
    returns  (Np, Co)  out_dtype
    """
    n_pad = a.shape[0]
    c_p = x.shape[1]
    c_o = w_l.shape[1]
    tm, tk = tile_m, tile_k
    assert n_pad % tm == 0 and n_pad % tk == 0
    grid = (n_pad // tm, n_pad // tk)

    def a_spec(buffered):
        if buffered:
            # A is the only large stream; a third buffer hides DMA-issue jitter.
            return pl.BlockSpec((tm, tk), lambda i, k: (i, k),
                                pipeline_mode=pl.Buffered(3))
        return pl.BlockSpec((tm, tk), lambda i, k: (i, k))

    common_specs = [
        pl.BlockSpec((tm, 1), lambda i, k: (i, 0)),        # 1/deg (per-i)
        pl.BlockSpec((c_p, c_o), lambda i, k: (0, 0)),     # W_l (resident)
        pl.BlockSpec((c_p, c_o), lambda i, k: (0, 0)),     # W_r (resident)
        pl.BlockSpec((1, c_o), lambda i, k: (0, 0)),       # bias (resident)
    ]

    if x_resident:
        kernel = functools.partial(_sage_kernel_resident,
                                   apply_relu=apply_relu,
                                   tile_m=tm, tile_k=tk)
        x_specs = [pl.BlockSpec((n_pad, c_p), lambda i, k: (0, 0))]
        operands = (a, x, inv_deg, w_l, w_r, b)
        x_bytes = n_pad * c_p * x.dtype.itemsize
    else:
        kernel = functools.partial(_sage_kernel_streamed,
                                   apply_relu=apply_relu)
        x_specs = [pl.BlockSpec((tk, c_p), lambda i, k: (k, 0)),   # x K-slice
                   pl.BlockSpec((tm, c_p), lambda i, k: (i, 0))]   # x M-slice
        operands = (a, x, x, inv_deg, w_l, w_r, b)
        # x K-slices are re-streamed once per row tile; x M-slices once total.
        x_bytes = (n_pad // tm + 1) * n_pad * c_p * x.dtype.itemsize

    flops = 2 * n_pad * n_pad * c_p + 2 * 2 * n_pad * c_p * c_o
    bytes_accessed = (
        n_pad * n_pad * a.dtype.itemsize          # adjacency (int8)
        + x_bytes                                 # features (incl. restream)
        + n_pad * 4                               # 1/deg
        + 2 * c_p * c_o * w_l.dtype.itemsize      # weights
        + c_o * 4                                 # bias
        + n_pad * c_o * jnp.dtype(out_dtype).itemsize)  # output

    def call(buffered):
        return pl.pallas_call(
            kernel,
            out_shape=jax.ShapeDtypeStruct((n_pad, c_o), out_dtype),
            grid_spec=pltpu.PrefetchScalarGridSpec(
                num_scalar_prefetch=0,
                grid=grid,
                in_specs=[a_spec(buffered)] + x_specs + common_specs,
                out_specs=pl.BlockSpec((tm, c_o), lambda i, k: (i, 0)),
                scratch_shapes=[pltpu.VMEM((tm, c_p), jnp.float32)],
            ),
            compiler_params=pltpu.CompilerParams(
                dimension_semantics=("parallel", "arbitrary"),
                vmem_limit_bytes=_vmem_limit_bytes(),
            ),
            cost_estimate=pl.CostEstimate(
                flops=flops, transcendentals=0,
                bytes_accessed=bytes_accessed),
        )(*operands)

    if triple_buffer_a:
        try:
            return call(True)
        except Exception:
            # Fall back if this jax build rejects multi-buffered BlockSpecs.
            pass
    return call(False)


def build_adjacency(edge_index, num_nodes):
    """Exact integer edge counts + per-destination 1/deg (plain-JAX glue).

    A_counts[i, j] = #edges j->i; mean aggregation = (A_counts @ x) * (1/deg),
    which matches PyG scatter_mean including duplicate edges.
    """
    src = edge_index[0]
    dst = edge_index[1]
    counts = jnp.zeros((num_nodes, num_nodes), dtype=jnp.int32)
    counts = counts.at[dst, src].add(1)
    deg = jnp.sum(counts, axis=1, keepdims=True).astype(jnp.float32)
    inv_deg = 1.0 / jnp.maximum(deg, 1.0)
    return counts, inv_deg


def init_params(key, in_channels, hidden_channels, out_channels, num_layers):
    """Deterministic parameter init matching SAGEConv shapes.

    Per layer: lin_l (with bias) on aggregated neighbors, lin_r (no bias) on
    root features. Weights stored as [Cin, Cout] for the kernel matmuls.
    """
    dims = [in_channels] + [hidden_channels] * (num_layers - 1) + [out_channels]
    params = []
    for layer in range(num_layers):
        c_in, c_out = dims[layer], dims[layer + 1]
        key, k1, k2, k3 = jax.random.split(key, 4)
        scale = 1.0 / jnp.sqrt(jnp.float32(c_in))
        w_l = jax.random.uniform(k1, (c_in, c_out), jnp.float32, -scale, scale)
        b_l = jax.random.uniform(k2, (1, c_out), jnp.float32, -scale, scale)
        w_r = jax.random.uniform(k3, (c_in, c_out), jnp.float32, -scale, scale)
        params.append((w_l, b_l, w_r))
    return params


def graphsage_forward(x, edge_index, params, *,
                      x_resident_max_bytes=X_RESIDENT_MAX_BYTES):
    n, c_in = x.shape
    num_layers = len(params)

    n_pad, tile_m, tile_k = _choose_layout(n)

    # int8 adjacency (half the dominant HBM stream vs bf16) + exact f32 1/deg.
    counts, inv_deg = build_adjacency(edge_index, n)
    # TODO(synk): edge multiplicities > 127 would saturate int8; widen if needed.
    a_pad = _pad2d(jnp.minimum(counts, 127), n_pad, n_pad).astype(jnp.int8)
    invdeg_pad = _pad2d(inv_deg, n_pad, 1)                       # f32

    c_pad = _round_up(c_in, LANE)
    xp = _pad2d(x, n_pad, c_pad).astype(jnp.bfloat16)

    for i, (w_l, b_l, w_r) in enumerate(params):
        c_in_l, c_out_l = w_l.shape
        c_in_p = _round_up(c_in_l, LANE)
        c_out_p = _round_up(c_out_l, LANE)
        assert xp.shape == (n_pad, c_in_p)
        wl_p = _pad2d(w_l, c_in_p, c_out_p).astype(jnp.bfloat16)
        wr_p = _pad2d(w_r, c_in_p, c_out_p).astype(jnp.bfloat16)
        b_p = _pad2d(b_l, 1, c_out_p)                            # f32
        last = i == num_layers - 1
        x_resident = n_pad * c_in_p * xp.dtype.itemsize <= x_resident_max_bytes
        xp = sage_layer(
            a_pad, invdeg_pad, xp, wl_p, wr_p, b_p,
            apply_relu=not last,
            out_dtype=jnp.float32 if last else jnp.bfloat16,
            tile_m=tile_m, tile_k=tile_k,
            x_resident=x_resident)
        # F.dropout is identity in eval mode.

    out_channels = params[-1][0].shape[1]
    return xp[:n, :out_channels].astype(jnp.float32)


def reference_forward(x, edge_index, params):
    """Pure-JAX f32 reference for sanity checking."""
    n = x.shape[0]
    counts, inv_deg = build_adjacency(edge_index, n)
    a = counts.astype(jnp.float32) * inv_deg
    num_layers = len(params)
    for i, (w_l, b_l, w_r) in enumerate(params):
        out = (a @ x) @ w_l + b_l + x @ w_r
        if i < num_layers - 1:
            out = jnp.maximum(out, 0.0)
        x = out
    return x


if __name__ == "__main__":
    # Small deterministic example consistent with the module's forward signature.
    num_nodes = 16
    num_edges = 40
    in_channels = 8
    hidden_channels = 32
    out_channels = 16
    num_layers = 2

    key = jax.random.PRNGKey(0)
    key, kx, ke_src, ke_dst, kp = jax.random.split(key, 5)

    x = jax.random.normal(kx, (num_nodes, in_channels), dtype=jnp.float32)
    src = jax.random.randint(ke_src, (num_edges,), 0, num_nodes, dtype=jnp.int32)
    dst = jax.random.randint(ke_dst, (num_edges,), 0, num_nodes, dtype=jnp.int32)
    edge_index = jnp.stack([src, dst], axis=0)  # [2, E]

    params = init_params(kp, in_channels, hidden_channels, out_channels,
                         num_layers)
    ref = reference_forward(x, edge_index, params)

    # Default path: x VMEM-resident, sliced in-kernel with pl.ds.
    out = jax.block_until_ready(graphsage_forward(x, edge_index, params))
    assert out.shape == (num_nodes, out_channels)
    # bf16 MXU path with f32 accumulation + exact int A / f32 1/deg rescale.
    assert jnp.allclose(out, ref, atol=5e-2, rtol=5e-2), float(
        jnp.max(jnp.abs(out - ref)))

    # Also exercise the streamed-x fallback path (used for large graphs).
    out_s = jax.block_until_ready(
        graphsage_forward(x, edge_index, params, x_resident_max_bytes=0))
    assert jnp.allclose(out_s, ref, atol=5e-2, rtol=5e-2), float(
        jnp.max(jnp.abs(out_s - ref)))

    print("KERNEL_OK")
</pallas_src>

<mosaic_0001>
module attributes {stable_mosaic.version = 11 : i64} {
  func.func @_sage_kernel_resident(%arg0: i32, %arg1: i32, %arg2: memref<128x128xi8, #tpu.memory_space<vmem>>, %arg3: memref<128x128xbf16, #tpu.memory_space<vmem>>, %arg4: memref<128x1xf32, #tpu.memory_space<vmem>>, %arg5: memref<128x128xbf16, #tpu.memory_space<vmem>>, %arg6: memref<128x128xbf16, #tpu.memory_space<vmem>>, %arg7: memref<1x128xf32, #tpu.memory_space<vmem>>, %arg8: memref<128x128xbf16, #tpu.memory_space<vmem>>, %arg9: memref<128x128xf32, #tpu.memory_space<vmem>>) attributes {dimension_semantics = [#tpu.dimension_semantics<parallel>, #tpu.dimension_semantics<arbitrary>], iteration_bounds = array<i64: 1, 1>, scalar_prefetch = 0 : i64, scratch_operands = 1 : i64, tpu.core_type = #tpu.core_type<tc>, window_params = [{transform_indices = @transform_0, window_bounds = array<i64: 128, 128>}, {pipeline_mode = #tpu.pipeline_mode<synchronous>, transform_indices = @transform_1, window_bounds = array<i64: 128, 128>}, {transform_indices = @transform_2, window_bounds = array<i64: 128, 1>}, {pipeline_mode = #tpu.pipeline_mode<synchronous>, transform_indices = @transform_3, window_bounds = array<i64: 128, 128>}, {pipeline_mode = #tpu.pipeline_mode<synchronous>, transform_indices = @transform_4, window_bounds = array<i64: 128, 128>}, {pipeline_mode = #tpu.pipeline_mode<synchronous>, transform_indices = @transform_5, window_bounds = array<i64: 1, 128>}, {transform_indices = @transform_6, window_bounds = array<i64: 128, 128>}]} {
    %c0_i32 = arith.constant 0 : i32
    %0 = arith.cmpi eq, %arg1, %c0_i32 : i32
    %1 = arith.extui %0 : i1 to i32
    %c0_i32_0 = arith.constant 0 : i32
    %2 = arith.cmpi ne, %1, %c0_i32_0 : i32
    scf.if %2 {
      %cst_9 = arith.constant 0.000000e+00 : f32
      %16 = vector.broadcast %cst_9 : f32 to vector<128x128xf32>
      %c0_10 = arith.constant 0 : index
      %c0_11 = arith.constant 0 : index
      %17 = vector.load %arg9[%c0_10, %c0_11] : memref<128x128xf32, #tpu.memory_space<vmem>>, vector<128x128xf32>
      tpu.vector_store %arg9[%c0_10, %c0_11], %16 {strides = array<i32>} : memref<128x128xf32, #tpu.memory_space<vmem>>, vector<128x128xf32>,
    } else {
    }
    %c0 = arith.constant 0 : index
    %c0_1 = arith.constant 0 : index
    %3 = vector.load %arg2[%c0, %c0_1] : memref<128x128xi8, #tpu.memory_space<vmem>>, vector<128x128xi8>
    %4 = arith.sitofp %3 : vector<128x128xi8> to vector<128x128xbf16>
    %c128_i32 = arith.constant 128 : i32
    %5 = arith.muli %arg1, %c128_i32 : i32
    %6 = tpu.assume_multiple %5, 128 : i32
    %7 = arith.index_cast %6 : i32 to index
    %c0_2 = arith.constant 0 : index
    %8 = vector.load %arg3[%7, %c0_2] : memref<128x128xbf16, #tpu.memory_space<vmem>>, vector<128x128xbf16>
    %c0_3 = arith.constant 0 : index
    %c0_4 = arith.constant 0 : index
    %9 = vector.load %arg9[%c0_3, %c0_4] : memref<128x128xf32, #tpu.memory_space<vmem>>, vector<128x128xf32>
    %cst = arith.constant dense<0.000000e+00> : vector<128x128xf32>
    %10 = tpu.matmul %4, %8, %cst {dimension_numbers = #tpu.dot_dimension_numbers<[1], [0], [0], [1], [0, 0, 1, 1], [], []>} : vector<128x128xbf16>, vector<128x128xbf16>, vector<128x128xf32> -> vector<128x128xf32>
    %11 = arith.addf %9, %10 : vector<128x128xf32>
    %c0_5 = arith.constant 0 : index
    %c0_6 = arith.constant 0 : index
    %12 = vector.load %arg9[%c0_5, %c0_6] : memref<128x128xf32, #tpu.memory_space<vmem>>, vector<128x128xf32>
    tpu.vector_store %arg9[%c0_5, %c0_6], %11 {strides = array<i32>} : memref<128x128xf32, #tpu.memory_space<vmem>>, vector<128x128xf32>,
    %c0_i32_7 = arith.constant 0 : i32
    %13 = arith.cmpi eq, %arg1, %c0_i32_7 : i32
    %14 = arith.extui %13 : i1 to i32
    %c0_i32_8 = arith.constant 0 : i32
    %15 = arith.cmpi ne, %14, %c0_i32_8 : i32
    scf.if %15 {
      %c128_i32_9 = arith.constant 128 : i32
      %16 = arith.muli %arg0, %c128_i32_9 : i32
      %17 = tpu.assume_multiple %16, 128 : i32
      %18 = arith.index_cast %17 : i32 to index
      %c0_10 = arith.constant 0 : index
      %19 = vector.load %arg3[%18, %c0_10] : memref<128x128xbf16, #tpu.memory_space<vmem>>, vector<128x128xbf16>
      %c0_11 = arith.constant 0 : index
      %c0_12 = arith.constant 0 : index
      %20 = vector.load %arg9[%c0_11, %c0_12] : memref<128x128xf32, #tpu.memory_space<vmem>>, vector<128x128xf32>
      %c0_13 = arith.constant 0 : index
      %c0_14 = arith.constant 0 : index
      %21 = vector.load %arg4[%c0_13, %c0_14] : memref<128x1xf32, #tpu.memory_space<vmem>>, vector<128x1xf32>
      %22 = vector.broadcast %21 : vector<128x1xf32> to vector<128x128xf32>
      %23 = arith.mulf %20, %22 : vector<128x128xf32>
      %24 = arith.truncf %23 : vector<128x128xf32> to vector<128x128xbf16>
      %c0_15 = arith.constant 0 : index
      %c0_16 = arith.constant 0 : index
      %25 = vector.load %arg5[%c0_15, %c0_16] : memref<128x128xbf16, #tpu.memory_space<vmem>>, vector<128x128xbf16>
      %cst_17 = arith.constant dense<0.000000e+00> : vector<128x128xf32>
      %26 = tpu.matmul %24, %25, %cst_17 {dimension_numbers = #tpu.dot_dimension_numbers<[1], [0], [0], [1], [0, 0, 1, 1], [], []>} : vector<128x128xbf16>, vector<128x128xbf16>, vector<128x128xf32> -> vector<128x128xf32>
      %c0_18 = arith.constant 0 : index
      %c0_19 = arith.constant 0 : index
      %27 = vector.load %arg6[%c0_18, %c0_19] : memref<128x128xbf16, #tpu.memory_space<vmem>>, vector<128x128xbf16>
      %cst_20 = arith.constant dense<0.000000e+00> : vector<128x128xf32>
      %28 = tpu.matmul %19, %27, %cst_20 {dimension_numbers = #tpu.dot_dimension_numbers<[1], [0], [0], [1], [0, 0, 1, 1], [], []>} : vector<128x128xbf16>, vector<128x128xbf16>, vector<128x128xf32> -> vector<128x128xf32>
      %29 = arith.addf %26, %28 : vector<128x128xf32>
      %c0_21 = arith.constant 0 : index
      %c0_22 = arith.constant 0 : index
      %30 = vector.load %arg7[%c0_21, %c0_22] : memref<1x128xf32, #tpu.memory_space<vmem>>, vector<1x128xf32>
      %31 = vector.broadcast %30 : vector<1x128xf32> to vector<128x128xf32>
      %32 = arith.addf %29, %31 : vector<128x128xf32>
      %cst_23 = arith.constant 0.000000e+00 : f32
      %33 = vector.broadcast %cst_23 : f32 to vector<128x128xf32>
      %34 = arith.maximumf %32, %33 : vector<128x128xf32>
      %35 = arith.truncf %34 : vector<128x128xf32> to vector<128x128xbf16>
      %c0_24 = arith.constant 0 : index
      %c0_25 = arith.constant 0 : index
      %36 = vector.load %arg8[%c0_24, %c0_25] : memref<128x128xbf16, #tpu.memory_space<vmem>>, vector<128x128xbf16>
      tpu.vector_store %arg8[%c0_24, %c0_25], %35 {strides = array<i32>} : memref<128x128xbf16, #tpu.memory_space<vmem>>, vector<128x128xbf16>,
    } else {
    }
    return
  }
  func.func @transform_0(%arg0: i32, %arg1: i32) -> (i32, i32) {
    %c0_i32 = arith.constant 0 : i32
    return %arg0, %arg1 : i32, i32
  }
  func.func @transform_1(%arg0: i32, %arg1: i32) -> (i32, i32) {
    %c0_i32 = arith.constant 0 : i32
    %c0_i32_0 = arith.constant 0 : i32
    %c0_i32_1 = arith.constant 0 : i32
    return %c0_i32, %c0_i32_0 : i32, i32
  }
  func.func @transform_2(%arg0: i32, %arg1: i32) -> (i32, i32) {
    %c0_i32 = arith.constant 0 : i32
    %c0_i32_0 = arith.constant 0 : i32
    return %arg0, %c0_i32 : i32, i32
  }
  func.func @transform_3(%arg0: i32, %arg1: i32) -> (i32, i32) {
    %c0_i32 = arith.constant 0 : i32
    %c0_i32_0 = arith.constant 0 : i32
    %c0_i32_1 = arith.constant 0 : i32
    return %c0_i32, %c0_i32_0 : i32, i32
  }
  func.func @transform_4(%arg0: i32, %arg1: i32) -> (i32, i32) {
    %c0_i32 = arith.constant 0 : i32
    %c0_i32_0 = arith.constant 0 : i32
    %c0_i32_1 = arith.constant 0 : i32
    return %c0_i32, %c0_i32_0 : i32, i32
  }
  func.func @transform_5(%arg0: i32, %arg1: i32) -> (i32, i32) {
    %c0_i32 = arith.constant 0 : i32
    %c0_i32_0 = arith.constant 0 : i32
    %c0_i32_1 = arith.constant 0 : i32
    return %c0_i32, %c0_i32_0 : i32, i32
  }
  func.func @transform_6(%arg0: i32, %arg1: i32) -> (i32, i32) {
    %c0_i32 = arith.constant 0 : i32
    %c0_i32_0 = arith.constant 0 : i32
    return %arg0, %c0_i32 : i32, i32
  }
}

</mosaic_0001>

<bundles_post_ra>
// kernel: tpu_custom_call.1
= control target key start
LH: loop header
LB: loop body
LE: loop exit
PB: predicated region body
PF: predicated region fallthrough
CT: control target
= control target key end

     0   :  { %11 = vsyncpa [#allocation4], 0  ;;  %s1553_s0 = inlined_call_operand.hbm [shape: s8[128,128], index: 0, kind: input, shape index: {}]   ;;  %s1554_s1 = inlined_call_operand.vmem [shape: bf16[128,128], index: 1, kind: input, shape index: {}]   ;;  %s1555_s2 = inlined_call_operand.vmem [shape: f32[128,1], index: 2, kind: input, shape index: {}]   ;;  %s1556_s3 = inlined_call_operand.vmem [shape: bf16[128,128], index: 3, kind: input, shape index: {}]   ;;  %s1557_s4 = inlined_call_operand.hbm [shape: bf16[128,128], index: 4, kind: input, shape index: {}]   ;;  %s1558_s5 = inlined_call_operand.vmem [shape: f32[1,128], index: 5, kind: input, shape index: {}]   ;;  %s1559_s6 = inlined_call_operand.hbm [shape: bf16[128,128], index: 6, kind: output, shape index: {}]  }
   0x1   :  { %12 = vsyncpa [#allocation7], 0 }
   0x2   :  { %13 = vsyncpa [#allocation5], 0  ;;  %s1350_s21 = smov [#allocation3]  }
   0x3   :  { %s19_s22 = sshll.u32 %s1350_s21, 4  ;;  %s20_s22 = int_to_ptr.vmem [resolvable:$true] %s19_s22 }
   0x4   :  { %s1292_s23 = scalar_lea.vmem %s20_s22, 512  ;;  %p1297_p1 = scmp.lt.s32.totalorder %s20_s22, %s20_s22 }
   0x5   :  { %p1293_p0 = scmp.ne.s32.totalorder %s20_s22, %s1292_s23  ;;  %p1298_p2 = scmp.lt.s32.totalorder %s1292_s23, %s1292_s23 }
   0x7   :  { %p1299_p3 = por %p1298_p2, %p1297_p1 }
   0x9   :  { %p1300_p4 = pnand %p1299_p3, %p1293_p0 }
   0xb   :  { %1303 = shalt.err (!%p1300_p4)
}
   0xc   :  { %s1351_s24 = smov 128   ;;  %s1352_s25 = smov 8  }
   0xd   :  { %25 = dma.hbm_to_vmem [thread:$0]  %s1553_s0, 512, %s20_s22, [#allocation4], %s1351_s24, %s1351_s24, %s1352_s25  }
   0xe   :  { %s1353_s28 = smov [#allocation6]  }
   0xf   :  { %s37_s29 = sshll.u32 %s1353_s28, 4  ;;  %s38_s29 = int_to_ptr.vmem [resolvable:$true] %s37_s29 }
  0x10   :  { %s1312_s30 = scalar_lea.vmem %s38_s29, 1024  ;;  %p1317_p6 = scmp.lt.s32.totalorder %s38_s29, %s38_s29 }
  0x11   :  { %p1313_p5 = scmp.ne.s32.totalorder %s38_s29, %s1312_s30  ;;  %p1318_p7 = scmp.lt.s32.totalorder %s1312_s30, %s1312_s30 }
  0x13   :  { %p1319_p8 = por %p1318_p7, %p1317_p6 }
  0x15   :  { %p1320_p9 = pnand %p1319_p8, %p1313_p5 }
  0x17   :  { %1323 = shalt.err (!%p1320_p9)
}
  0x18   :  { %s1354_s7 = smov 64   ;;  %s1355_s8 = smov 4  }
  0x19   :  { %43 = dma.hbm_to_vmem [thread:$0]  %s1557_s4, 1024, %s38_s29, [#allocation7], %s1354_s7, %s1354_s7, %s1355_s8  }
  0x1a   :  { %1344 = dma.done.wait [#allocation4], 512  }
  0x1b   :  { %1345 = vsyncadd [#allocation4], 4294966784 }
  0x1c   :  { %1346 = dma.done.wait [#allocation7], 1024  }
  0x1d   :  { %1347 = vsyncadd [#allocation7], 4294966272  ;;  %v1356_v0 = vmov 0   ;;  %v1252_v1 = vld [vmem:[%s1554_s1 + $0x38] sm:$0xff]   ;;  %v1253_v2 = vld [vmem:[%s1554_s1 + $0x30] sm:$0xff]  }
  0x1e   :  { %1251 = vset.pattern.permute.xlu1 %v1356_v0  ;;  %1250 = vset.pattern.permute.xlu0 %v1356_v0  ;;  %v1254_v3 = vld [vmem:[%s1554_s1 + $0x28] sm:$0xff]   ;;  %v1255_v4 = vld [vmem:[%s1554_s1 + $0x20] sm:$0xff]   ;;  %v1256_v11 = vld [vmem:[%s1554_s1 + $0x18] sm:$0xff]  }
  0x1f   :  { %1130 = vmatprep.subr.bf16.mxu0 %v1252_v1  ;;  %v1414_v5 = vld [vmem:[#allocation3] sm:$0xff]  ;;  %v348_v9 = vld [vmem:[%s1555_s2 + $0x48] sm:$0xff]  ;;  %v1257_v12 = vld [vmem:[%s1554_s1 + $0x10] sm:$0xff]  }
  0x20   :  { %1131 = vmatpush3.bf16.msra.mxu0 %v1252_v1  ;;  %v77_v6 = vunpack.c.l.s8.bf16 %v1414_v5  ;;  %v347_v7 = vld [vmem:[%s1555_s2 + $0x40] sm:$0xff]  ;;  %v340_v10 = vld [vmem:[%s1555_s2 + $0x8] sm:$0xff]  ;;  %v342_v13 = vld [vmem:[%s1555_s2 + $0x18] sm:$0xff]  ;;  %v78_v32 = vunpack.c.h.s8.bf16 %v1414_v5 }
  0x21   :  { %1132 = vmatprep.subr.bf16.mxu0 %v1253_v2  ;;  %v339_v8 = vld [vmem:[%s1555_s2] sm:$0xff]  ;;  %397 = vperm.xlu1 %1251, %v347_v7   ;;  %v341_v14 = vld [vmem:[%s1555_s2 + $0x10] sm:$0xff]  ;;  %v1260_v15 = vld [vmem:[#allocation6 + $0x38] sm:$0xff]  }
  0x22   :  { %357 = vperm.xlu0 %1250, %v339_v8   ;;  %1146 = vmatprep.mubr.bf16.mxu0 %v77_v6  ;;  %v1261_v16 = vld [vmem:[#allocation6 + $0x30] sm:$0xff]   ;;  %v1258_v17 = vld [vmem:[%s1554_s1 + $0x8] sm:$0xff]   ;;  %v350_v18 = vld [vmem:[%s1555_s2 + $0x58] sm:$0xff] }
  0x23   :  { %1162 = vmatprep.subr.bf16.mxu1 %v1260_v15  ;;  %v349_v19 = vld [vmem:[%s1555_s2 + $0x50] sm:$0xff]  ;;  %v1262_v20 = vld [vmem:[#allocation6 + $0x28] sm:$0xff]   ;;  %v1259_v21 = vld [vmem:[%s1554_s1] sm:$0xff]  }
  0x24   :  { %1133 = vmatpush3.bf16.msra.mxu0 %v1253_v2  ;;  %1163 = vmatpush3.bf16.msra.mxu1 %v1260_v15  ;;  %v344_v22 = vld [vmem:[%s1555_s2 + $0x28] sm:$0xff]  ;;  %v343_v23 = vld [vmem:[%s1555_s2 + $0x20] sm:$0xff]  ;;  %v1264_v29 = vld [vmem:[#allocation6 + $0x18] sm:$0xff]  }
  0x25   :  { %1134 = vmatprep.subr.bf16.mxu0 %v1254_v3  ;;  %402 = vperm.xlu1 %1251, %v348_v9   ;;  %v1263_v24 = vld [vmem:[#allocation6 + $0x20] sm:$0xff]   ;;  %v352_v25 = vld [vmem:[%s1555_s2 + $0x68] sm:$0xff]  ;;  %v1266_v30 = vld [vmem:[%s1556_s3 + $0x38] sm:$0xff]  }
  0x26   :  { %362 = vperm.xlu0 %1250, %v340_v10   ;;  %1164 = vmatprep.subr.bf16.mxu1 %v1261_v16  ;;  %v351_v26 = vld [vmem:[%s1555_s2 + $0x60] sm:$0xff]  ;;  %v74_v27 = vld [vmem:[#allocation3 + $0x8] sm:$0xff]  ;;  %v346_v31 = vld [vmem:[%s1555_s2 + $0x38] sm:$0xff] }
  0x27   :  { %v1271_v28 = vld [vmem:[%s1554_s1] sm:$0xff]   ;;  %v345_v33 = vld [vmem:[%s1555_s2 + $0x30] sm:$0xff]  ;;  %v79_v34 = vunpack.c.l.s8.bf16 %v74_v27  ;;  %v354_v37 = vld [vmem:[%s1555_s2 + $0x78] sm:$0xff]  ;;  %v80_v42 = vunpack.c.h.s8.bf16 %v74_v27 }
  0x28   :  { %1135 = vmatpush3.bf16.msra.mxu0 %v1254_v3  ;;  %1165 = vmatpush3.bf16.msra.mxu1 %v1261_v16  ;;  %v1265_v35 = vld [vmem:[#allocation6 + $0x10] sm:$0xff]   ;;  %v1267_v40 = vld [vmem:[#allocation6 + $0x8] sm:$0xff]   ;;  %v1269_v44 = vld [vmem:[#allocation6] sm:$0xff]  }
  0x29   :  { %1136 = vmatprep.subr.bf16.mxu0 %v1255_v4  ;;  %372 = vperm.xlu1 %1251, %v342_v13   ;;  %v1268_v36 = vld [vmem:[%s1556_s3 + $0x30] sm:$0xff]   ;;  %v1270_v41 = vld [vmem:[%s1556_s3 + $0x28] sm:$0xff]   ;;  %v1273_v45 = vld [vmem:[%s1556_s3 + $0x20] sm:$0xff]  }
  0x2a   :  { %367 = vperm.xlu0 %1250, %v341_v14   ;;  %1166 = vmatprep.subr.bf16.mxu1 %v1262_v20  ;;  %v75_v38 = vld [vmem:[#allocation3 + $0x10] sm:$0xff]  ;;  %v76_v46 = vld [vmem:[#allocation3 + $0x18] sm:$0xff]  ;;  %v1272_v50 = vld [vmem:[%s1554_s1 + $0x8] sm:$0xff]  }
  0x2b   :  { %1178 = vmatprep.mubr.bf16.mxu1 %v1271_v28  ;;  %v353_v39 = vld [vmem:[%s1555_s2 + $0x70] sm:$0xff]  ;;  %v81_v43 = vunpack.c.l.s8.bf16 %v75_v38  ;;  %v1274_v47 = vld [vmem:[%s1556_s3 + $0x18] sm:$0xff]   ;;  %v82_v48 = vunpack.c.h.s8.bf16 %v75_v38  ;;  %v83_v49 = vunpack.c.l.s8.bf16 %v76_v46  ;;  %v84_v52 = vunpack.c.h.s8.bf16 %v76_v46  ;;  %v1278_v55 = vld [vmem:[%s1556_s3 + $0x8] sm:$0xff]  }
  0x2c   :  { %1137 = vmatpush3.bf16.msra.mxu0 %v1255_v4  ;;  %1167 = vmatpush3.bf16.msra.mxu1 %v1262_v20  ;;  %v1275_v51 = vld [vmem:[%s1554_s1 + $0x10] sm:$0xff]   ;;  %v1276_v53 = vld [vmem:[%s1554_s1 + $0x18] sm:$0xff]   ;;  %v1279_v56 = vld [vmem:[%s1554_s1 + $0x20] sm:$0xff]  }
  0x2d   :  { %1138 = vmatprep.subr.bf16.mxu0 %v1256_v11  ;;  %412 = vperm.xlu1 %1251, %v350_v18   ;;  %v1277_v54 = vld [vmem:[%s1556_s3 + $0x10] sm:$0xff]   ;;  %v1280_v57 = vld [vmem:[%s1554_s1 + $0x28] sm:$0xff]   ;;  %v1281_v58 = vld [vmem:[%s1556_s3] sm:$0xff]  }
  0x2e   :  { %407 = vperm.xlu0 %1250, %v349_v19   ;;  %1168 = vmatprep.subr.bf16.mxu1 %v1263_v24  ;;  %v1282_v59 = vld [vmem:[%s1554_s1 + $0x30] sm:$0xff]   ;;  %v1283_v60 = vld [vmem:[%s1554_s1 + $0x38] sm:$0xff]  }
  0x30   :  { %1139 = vmatpush3.bf16.msra.mxu0 %v1256_v11  ;;  %1169 = vmatpush3.bf16.msra.mxu1 %v1263_v24 }
  0x31   :  { %1140 = vmatprep.subr.bf16.mxu0 %v1257_v12  ;;  %382 = vperm.xlu1 %1251, %v344_v22  }
  0x32   :  { %377 = vperm.xlu0 %1250, %v343_v23   ;;  %1170 = vmatprep.subr.bf16.mxu1 %v1264_v29 }
  0x34   :  { %1141 = vmatpush3.bf16.msra.mxu0 %v1257_v12  ;;  %1171 = vmatpush3.bf16.msra.mxu1 %v1264_v29 }
  0x35   :  { %1142 = vmatprep.subr.bf16.mxu0 %v1258_v17  ;;  %422 = vperm.xlu1 %1251, %v352_v25  }
  0x36   :  { %417 = vperm.xlu0 %1250, %v351_v26   ;;  %1172 = vmatprep.subr.bf16.mxu1 %v1265_v35 }
  0x38   :  { %1143 = vmatpush3.bf16.msra.mxu0 %v1258_v17  ;;  %1173 = vmatpush3.bf16.msra.mxu1 %v1265_v35 }
  0x39   :  { %1144 = vmatprep.subr.bf16.mxu0 %v1259_v21  ;;  %392 = vperm.xlu1 %1251, %v346_v31  }
  0x3a   :  { %387 = vperm.xlu0 %1250, %v345_v33   ;;  %1174 = vmatprep.subr.bf16.mxu1 %v1267_v40 }
  0x3c   :  { %1145 = vmatpush3.bf16.msra.mxu0 %v1259_v21  ;;  %1175 = vmatpush3.bf16.msra.mxu1 %v1267_v40 }
  0x3d   :  { %1194 = vmatprep.subr.bf16.mxu0 %v1266_v30  ;;  %432 = vperm.xlu1 %1251, %v354_v37  }
  0x3e   :  { %427 = vperm.xlu0 %1250, %v353_v39   ;;  %1176 = vmatprep.subr.bf16.mxu1 %v1269_v44 }
  0x3f   :  { %1147 = vmatmul.mubr.bf16.vlgmr.msra.gmra.mxu0 %v78_v32 }
  0x40   :  { %1150 = vmatprep.mubr.bf16.mxu0 %v79_v34  ;;  %1195 = vmatpush3.bf16.msra.mxu0 %v1266_v30 }
  0x41   :  { %1196 = vmatprep.subr.bf16.mxu0 %v1268_v36  ;;  %1177 = vmatpush3.bf16.msra.mxu1 %v1269_v44 }
  0x42   :  { %1226 = vmatprep.subr.bf16.mxu1 %v1266_v30 }
  0x44   :  { %1197 = vmatpush3.bf16.msra.mxu0 %v1268_v36  ;;  %1179 = vmatmul.mubr.bf16.vlgmr.msra.gmra.mxu1 %v1272_v50 }
  0x45   :  { %1198 = vmatprep.subr.bf16.mxu0 %v1270_v41  ;;  %1234 = vmatpush3.bf16.msra.mxu1 %v1266_v30 }
  0x46   :  { %1182 = vmatprep.mubr.bf16.mxu1 %v1275_v51  ;;  %1227 = vmatprep.subr.bf16.mxu1 %v1268_v36 }
  0x47   :  { %1151 = vmatmul.mubr.bf16.gmra.mxu0 %v80_v42 }
  0x48   :  { %1154 = vmatprep.mubr.bf16.mxu0 %v81_v43  ;;  %1199 = vmatpush3.bf16.msra.mxu0 %v1270_v41 }
  0x49   :  { %1200 = vmatprep.subr.bf16.mxu0 %v1273_v45  ;;  %1235 = vmatpush3.bf16.msra.mxu1 %v1268_v36 }
  0x4a   :  { %1228 = vmatprep.subr.bf16.mxu1 %v1270_v41 }
  0x4c   :  { %1201 = vmatpush3.bf16.msra.mxu0 %v1273_v45  ;;  %1183 = vmatmul.mubr.bf16.gmra.mxu1 %v1276_v53 }
  0x4d   :  { %1202 = vmatprep.subr.bf16.mxu0 %v1274_v47  ;;  %1236 = vmatpush3.bf16.msra.mxu1 %v1270_v41 }
  0x4e   :  { %1229 = vmatprep.subr.bf16.mxu1 %v1273_v45  ;;  %1186 = vmatprep.mubr.bf16.mxu1 %v1279_v56 }
  0x4f   :  { %1155 = vmatmul.mubr.bf16.gmra.mxu0 %v82_v48 }
  0x50   :  { %1158 = vmatprep.mubr.bf16.mxu0 %v83_v49  ;;  %1203 = vmatpush3.bf16.msra.mxu0 %v1274_v47 }
  0x51   :  { %1237 = vmatpush3.bf16.msra.mxu1 %v1273_v45  ;;  %1204 = vmatprep.subr.bf16.mxu0 %v1277_v54 }
  0x52   :  { %1230 = vmatprep.subr.bf16.mxu1 %v1274_v47 }
  0x54   :  { %1205 = vmatpush3.bf16.msra.mxu0 %v1277_v54  ;;  %1187 = vmatmul.mubr.bf16.gmra.mxu1 %v1280_v57 }
  0x55   :  { %1238 = vmatpush3.bf16.msra.mxu1 %v1274_v47  ;;  %1206 = vmatprep.subr.bf16.mxu0 %v1278_v55 }
  0x56   :  { %1231 = vmatprep.subr.bf16.mxu1 %v1277_v54  ;;  %1190 = vmatprep.mubr.bf16.mxu1 %v1282_v59 }
  0x57   :  { %1159 = vmatmul.mubr.bf16.gmra.mxu0 %v84_v52 }
  0x58   :  { %1207 = vmatpush3.bf16.msra.mxu0 %v1278_v55 }
  0x59   :  { %1239 = vmatpush3.bf16.msra.mxu1 %v1277_v54  ;;  %1208 = vmatprep.subr.bf16.mxu0 %v1281_v58 }
  0x5a   :  { %1232 = vmatprep.subr.bf16.mxu1 %v1278_v55 }
  0x5c   :  { %1209 = vmatpush3.bf16.msra.mxu0 %v1281_v58  ;;  %1191 = vmatmul.mubr.bf16.gmra.mxu1 %v1283_v60 }
  0x5d   :  { %1240 = vmatpush3.bf16.msra.mxu1 %v1278_v55 }
  0x5e   :  { %1233 = vmatprep.subr.bf16.mxu1 %v1281_v58 }
  0x61   :  { %1241 = vmatpush3.bf16.msra.mxu1 %v1281_v58 }
  0x9c   :  { %v398_v61 = vpop.permute.xlu1 %397 }
  0x9d   :  { %v358_v62 = vpop.permute.xlu0 %357 }
  0xa0   :  { %v403_v63 = vpop.permute.xlu1 %402 }
  0xa1   :  { %v363_v0 = vpop.permute.xlu0 %362 }
  0xa4   :  { %v373_v1 = vpop.permute.xlu1 %372 }
  0xa5   :  { %v368_v2 = vpop.permute.xlu0 %367 }
  0xa8   :  { %v413_v3 = vpop.permute.xlu1 %412 }
  0xa9   :  { %v408_v4 = vpop.permute.xlu0 %407 }
  0xac   :  { %v383_v6 = vpop.permute.xlu1 %382 }
  0xad   :  { %v378_v8 = vpop.permute.xlu0 %377 }
  0xb0   :  { %v423_v12 = vpop.permute.xlu1 %422 }
  0xb1   :  { %v418_v17 = vpop.permute.xlu0 %417 }
  0xb4   :  { %v393_v22 = vpop.permute.xlu1 %392 }
  0xb5   :  { %v388_v25 = vpop.permute.xlu0 %387 }
  0xb8   :  { %v433_v44 = vpop.permute.xlu1 %432 }
  0xb9   :  { %v428_v47 = vpop.permute.xlu0 %427 }
  0xff   :  { %v1148_v5 = vpop.f32.mrf.mxu0 }
 0x100   :  { %v437_v15 = vmul.f32 %v1148_v5, %v368_v2 }
 0x101   :  { %v204_v7 = vpop.f32.mrf.mxu0 }
 0x102   :  { %v435_v13 = vmul.f32 %v358_v62, %v204_v7 }
 0x103   :  { %v1149_v9 = vpop.f32.mrf.mxu0 }
 0x104   :  { %v438_v10 = vmul.f32 %v1149_v9, %v373_v1  ;;  %v1180_v53 = vpop.f32.mrf.mxu1 }
 0x105   :  { %v207_v11 = vpop.f32.mrf.mxu0 }
 0x106   :  { %v436_v14 = vmul.f32 %v363_v0, %v207_v11  ;;  %v452_v19 = vpack.c.bf16 %v438_v10, %v437_v15  ;;  %v621_v54 = vpop.f32.mrf.mxu1 }
 0x107   :  { %v1152_v16 = vpop.f32.mrf.mxu0 }
 0x108   :  { %v451_v18 = vpack.c.bf16 %v436_v14, %v435_v13  ;;  %v441_v28 = vmul.f32 %v1152_v16, %v388_v25  ;;  %v1181_v55 = vpop.f32.mrf.mxu1 }
 0x109   :  { %v220_v20 = vpop.f32.mrf.mxu0 }
 0x10a   :  { %1210 = vmatprep.mubr.bf16.mxu0 %v451_v18  ;;  %v439_v26 = vmul.f32 %v378_v8, %v220_v20  ;;  %v624_v56 = vpop.f32.mrf.mxu1 }
 0x10b   :  { %v1153_v21 = vpop.f32.mrf.mxu0  ;;  %1211 = vmatmul.mubr.bf16.vlgmr.msra.gmra.mxu0 %v452_v19 }
 0x10c   :  { %v442_v23 = vmul.f32 %v1153_v21, %v393_v22  ;;  %v1184_v57 = vpop.f32.mrf.mxu1 }
 0x10d   :  { %v223_v24 = vpop.f32.mrf.mxu0 }
 0x10e   :  { %v440_v27 = vmul.f32 %v383_v6, %v223_v24  ;;  %v454_v31 = vpack.c.bf16 %v442_v23, %v441_v28  ;;  %v637_v58 = vpop.f32.mrf.mxu1 }
 0x10f   :  { %v1156_v29 = vpop.f32.mrf.mxu0 }
 0x110   :  { %v453_v30 = vpack.c.bf16 %v440_v27, %v439_v26  ;;  %v445_v38 = vmul.f32 %v1156_v29, %v408_v4  ;;  %v1185_v59 = vpop.f32.mrf.mxu1 }
 0x111   :  { %v236_v32 = vpop.f32.mrf.mxu0 }
 0x112   :  { %1214 = vmatprep.mubr.bf16.mxu0 %v453_v30  ;;  %v443_v36 = vmul.f32 %v398_v61, %v236_v32  ;;  %v640_v60 = vpop.f32.mrf.mxu1 }
 0x113   :  { %v1157_v33 = vpop.f32.mrf.mxu0  ;;  %1215 = vmatmul.mubr.bf16.gmra.mxu0 %v454_v31 }
 0x114   :  { %v446_v34 = vmul.f32 %v1157_v33, %v413_v3  ;;  %v1188_v61 = vpop.f32.mrf.mxu1  ;;  %v1529_v3 = vld [vmem:[%s1558_s5] ss:$0 sm:$0xff]  ;;  %s1357_s5 = smov [#allocation8]  }
 0x115   :  { %v239_v35 = vpop.f32.mrf.mxu0  ;;  %s953_s16 = sshll.u32 %s1357_s5, 4  ;;  %s954_s16 = int_to_ptr.vmem [resolvable:$true] %s953_s16 }
 0x116   :  { %v444_v37 = vmul.f32 %v403_v63, %v239_v35  ;;  %v456_v41 = vpack.c.bf16 %v446_v34, %v445_v38  ;;  %v653_v62 = vpop.f32.mrf.mxu1  ;;  %s1324_s17 = scalar_lea.vmem %s954_s16, 1024  ;;  %p1329_p11 = scmp.lt.s32.totalorder %s954_s16, %s954_s16 }
 0x117   :  { %v1160_v39 = vpop.f32.mrf.mxu0  ;;  %p1325_p10 = scmp.ne.s32.totalorder %s954_s16, %s1324_s17  ;;  %p1330_p12 = scmp.lt.s32.totalorder %s1324_s17, %s1324_s17 }
 0x118   :  { %v455_v40 = vpack.c.bf16 %v444_v37, %v443_v36  ;;  %v449_v50 = vmul.f32 %v1160_v39, %v428_v47  ;;  %v1189_v63 = vpop.f32.mrf.mxu1 }
 0x119   :  { %v252_v42 = vpop.f32.mrf.mxu0  ;;  %p1331_p13 = por %p1330_p12, %p1329_p11 }
 0x11a   :  { %1218 = vmatprep.mubr.bf16.mxu1 %v455_v40  ;;  %v447_v48 = vmul.f32 %v418_v17, %v252_v42  ;;  %v656_v0 = vpop.f32.mrf.mxu1 }
 0x11b   :  { %v1161_v43 = vpop.f32.mrf.mxu0  ;;  %1219 = vmatmul.mubr.bf16.vlgmr.msra.gmra.mxu1 %v456_v41  ;;  %p1332_p0 = pnand %p1331_p13, %p1325_p10 }
 0x11c   :  { %v450_v45 = vmul.f32 %v1161_v43, %v433_v44  ;;  %v1192_v4 = vpop.f32.mrf.mxu1 }
 0x11d   :  { %v255_v46 = vpop.f32.mrf.mxu0 }
 0x11e   :  { %v448_v49 = vmul.f32 %v423_v12, %v255_v46  ;;  %v458_v52 = vpack.c.bf16 %v450_v45, %v449_v50  ;;  %v669_v10 = vpop.f32.mrf.mxu1 }
 0x120   :  { %v457_v51 = vpack.c.bf16 %v448_v49, %v447_v48  ;;  %v1193_v20 = vpop.f32.mrf.mxu1 }
 0x122   :  { %1222 = vmatprep.mubr.bf16.mxu1 %v457_v51  ;;  %v672_v30 = vpop.f32.mrf.mxu1 }
 0x123   :  { %1223 = vmatmul.mubr.bf16.gmra.mxu1 %v458_v52 }
 0x1cb   :  { %v1212_v1 = vpop.f32.mrf.mxu0 }
 0x1cc   :  { %v775_v2 = vadd.f32 %v1212_v1, %v1180_v53 }
 0x1cd   :  { %v766_v5 = vpop.f32.mrf.mxu0 }
 0x1ce   :  { %v767_v6 = vadd.f32 %v766_v5, %v621_v54  ;;  %v838_v8 = vadd.f32 %v1529_v3, %v775_v2 }
 0x1cf   :  { %v1213_v7 = vpop.f32.mrf.mxu0 }
 0x1d0   :  { %v778_v9 = vadd.f32 %v1213_v7, %v1181_v55  ;;  %v836_v12 = vadd.f32 %v1529_v3, %v767_v6  ;;  %v854_v16 = vmax.f32 %v838_v8, 0.0 }
 0x1d1   :  { %v769_v11 = vpop.f32.mrf.mxu0 }
 0x1d2   :  { %v839_v13 = vadd.f32 %v1529_v3, %v778_v9  ;;  %v770_v14 = vadd.f32 %v769_v11, %v624_v56  ;;  %v852_v22 = vmax.f32 %v836_v12, 0.0 }
 0x1d3   :  { %v1216_v15 = vpop.f32.mrf.mxu0 }
 0x1d4   :  { %v855_v17 = vmax.f32 %v839_v13, 0.0  ;;  %v837_v18 = vadd.f32 %v1529_v3, %v770_v14  ;;  %v791_v19 = vadd.f32 %v1216_v15, %v1184_v57 }
 0x1d5   :  { %v782_v21 = vpop.f32.mrf.mxu0 }
 0x1d6   :  { %v1043_v23 = vpack.c.bf16 %v855_v17, %v854_v16  ;;  %v853_v24 = vmax.f32 %v837_v18, 0.0  ;;  %v783_v25 = vadd.f32 %v782_v21, %v637_v58  ;;  %v842_v28 = vadd.f32 %v1529_v3, %v791_v19 }
 0x1d7   :  { %v1217_v26 = vpop.f32.mrf.mxu0 }
 0x1d8   :  { %1075 = vst [vmem:[#allocation8 + $0x8] sm:$0xff] %v1043_v23   ;;  %v1038_v27 = vpack.c.bf16 %v853_v24, %v852_v22  ;;  %v794_v29 = vadd.f32 %v1217_v26, %v1185_v59  ;;  %v840_v32 = vadd.f32 %v1529_v3, %v783_v25  ;;  %v858_v36 = vmax.f32 %v842_v28, 0.0 }
 0x1d9   :  { %v785_v31 = vpop.f32.mrf.mxu0 }
 0x1da   :  { %1039 = vst [vmem:[#allocation8] sm:$0xff] %v1038_v27   ;;  %v843_v33 = vadd.f32 %v1529_v3, %v794_v29  ;;  %v786_v34 = vadd.f32 %v785_v31, %v640_v60  ;;  %v856_v41 = vmax.f32 %v840_v32, 0.0 }
 0x1db   :  { %v1220_v35 = vpop.f32.mrf.mxu1 }
 0x1dc   :  { %v859_v37 = vmax.f32 %v843_v33, 0.0  ;;  %v841_v38 = vadd.f32 %v1529_v3, %v786_v34  ;;  %v807_v39 = vadd.f32 %v1220_v35, %v1188_v61 }
 0x1dd   :  { %v798_v40 = vpop.f32.mrf.mxu1 }
 0x1de   :  { %v1053_v42 = vpack.c.bf16 %v859_v37, %v858_v36  ;;  %v857_v43 = vmax.f32 %v841_v38, 0.0  ;;  %v799_v44 = vadd.f32 %v798_v40, %v653_v62  ;;  %v846_v47 = vadd.f32 %v1529_v3, %v807_v39 }
 0x1df   :  { %v1221_v45 = vpop.f32.mrf.mxu1 }
 0x1e0   :  { %1077 = vst [vmem:[#allocation8 + $0x18] sm:$0xff] %v1053_v42   ;;  %v1048_v46 = vpack.c.bf16 %v857_v43, %v856_v41  ;;  %v810_v48 = vadd.f32 %v1221_v45, %v1189_v63  ;;  %v844_v50 = vadd.f32 %v1529_v3, %v799_v44  ;;  %v862_v54 = vmax.f32 %v846_v47, 0.0 }
 0x1e1   :  { %v801_v49 = vpop.f32.mrf.mxu1 }
 0x1e2   :  { %1076 = vst [vmem:[#allocation8 + $0x10] sm:$0xff] %v1048_v46   ;;  %v847_v51 = vadd.f32 %v1529_v3, %v810_v48  ;;  %v802_v52 = vadd.f32 %v801_v49, %v656_v0  ;;  %v860_v59 = vmax.f32 %v844_v50, 0.0 }
 0x1e3   :  { %v1224_v53 = vpop.f32.mrf.mxu1 }
 0x1e4   :  { %v863_v55 = vmax.f32 %v847_v51, 0.0  ;;  %v845_v56 = vadd.f32 %v1529_v3, %v802_v52  ;;  %v823_v57 = vadd.f32 %v1224_v53, %v1192_v4 }
 0x1e5   :  { %v814_v58 = vpop.f32.mrf.mxu1 }
 0x1e6   :  { %v1063_v60 = vpack.c.bf16 %v863_v55, %v862_v54  ;;  %v861_v61 = vmax.f32 %v845_v56, 0.0  ;;  %v815_v62 = vadd.f32 %v814_v58, %v669_v10  ;;  %v850_v2 = vadd.f32 %v1529_v3, %v823_v57 }
 0x1e7   :  { %v1225_v1 = vpop.f32.mrf.mxu1 }
 0x1e8   :  { %1079 = vst [vmem:[#allocation8 + $0x28] sm:$0xff] %v1063_v60   ;;  %v1058_v63 = vpack.c.bf16 %v861_v61, %v860_v59  ;;  %v826_v5 = vadd.f32 %v1225_v1, %v1193_v20  ;;  %v848_v0 = vadd.f32 %v1529_v3, %v815_v62  ;;  %v866_v9 = vmax.f32 %v850_v2, 0.0 }
 0x1e9   :  { %v817_v6 = vpop.f32.mrf.mxu1 }
 0x1ea   :  { %1078 = vst [vmem:[#allocation8 + $0x20] sm:$0xff] %v1058_v63   ;;  %v851_v7 = vadd.f32 %v1529_v3, %v826_v5  ;;  %v818_v8 = vadd.f32 %v817_v6, %v672_v30  ;;  %v864_v10 = vmax.f32 %v848_v0, 0.0 }
 0x1ec   :  { %v867_v4 = vmax.f32 %v851_v7, 0.0  ;;  %v849_v11 = vadd.f32 %v1529_v3, %v818_v8 }
 0x1ee   :  { %v1073_v12 = vpack.c.bf16 %v867_v4, %v866_v9  ;;  %v865_v13 = vmax.f32 %v849_v11, 0.0 }
 0x1f0   :  { %1081 = vst [vmem:[#allocation8 + $0x38] sm:$0xff] %v1073_v12   ;;  %v1068_v14 = vpack.c.bf16 %v865_v13, %v864_v10 }
 0x1f2   :  { %1080 = vst [vmem:[#allocation8 + $0x30] sm:$0xff] %v1068_v14  }
 0x1f3   :  { %1335 = shalt.err (!%p1332_p0)
}
 0x1f4   :  { %959 = dma.vmem_to_hbm [thread:$0]  %s954_s16, 1024, %s1559_s6, [#allocation5], %s1354_s7, %s1354_s7, %s1355_s8  }
 0x1f5   :  { %1348 = dma.done.wait [#allocation5], 1024  }
 0x1f6   :  { %1349 = vsyncadd [#allocation5], 4294966272 }
 0x1f7   :  { %963 = vsyncpa [#allocation4], 1 }
 0x1f8   :  { %964 = vsyncpa [#allocation7], 1 }
 0x1f9   :  { %965 = vsyncpa [#allocation5], 1 }

</bundles_post_ra>
